<compile_context>
chip_gen: v7x
topology: tpu7x:2x2x1
jax: 0.10.0
libtpu: 0.0.40
codegen_flags: <defaults>
</compile_context>

<pallas_src>
import functools
import math

import jax
import jax.numpy as jnp
from jax import lax
from jax.experimental import pallas as pl
from jax.experimental.pallas import tpu as pltpu


def _round_up(x, m):
    return ((x + m - 1) // m) * m


def _aam_kernel(x_ref, w_ref, winv_ref, label_ref, loss_ref, prec_ref,
                m_acc, l_acc, t_acc,
                *, cos_m, sin_m, th, mm, s, n_class, tile_c):
    tile = pl.program_id(0)
    n_tiles = pl.num_programs(0)

    @pl.when(tile == 0)
    def _init():
        m_acc[...] = jnp.full_like(m_acc, -jnp.inf)
        l_acc[...] = jnp.zeros_like(l_acc)
        t_acc[...] = jnp.zeros_like(t_acc)

    x = x_ref[...]                                  # (B, D) f32 (single DMA)
    w = w_ref[...]                                  # (D, TC) bf16 tile
    w_inv = winv_ref[...]                           # (1, TC) f32  = 1/||w_c||
    lab = label_ref[...]                            # (B, 1) int32

    B = x.shape[0]
    TC = w.shape[1]

    # 1 / max(||x||, 1e-12) via EUP rsqrt on the squared norm (clamp 1e-24).
    # Recomputed per tile (8x192) — cheaper than carrying scratch; x itself is
    # not re-DMA'd because its index_map is constant over the grid.
    x_inv = lax.rsqrt(jnp.maximum(jnp.sum(x * x, axis=-1, keepdims=True),
                                  1e-24))           # (B, 1)

    # bf16 x bf16 -> f32 MXU matmul, MK x KN (no transpose needed).
    raw = jnp.dot(x.astype(jnp.bfloat16), w,
                  preferred_element_type=jnp.float32)            # (B, TC)
    # Column-side normalization folded in after the MXU: true cosine.
    cosine = raw * x_inv * w_inv                                 # (B, TC)

    col0 = tile * tile_c
    class_ids = col0 + lax.broadcasted_iota(jnp.int32, (B, TC), 1)
    is_target = class_ids == lab                                 # (B, TC)
    in_tile = jnp.logical_and(lab >= col0, lab < col0 + tile_c)  # (B, 1)

    # Gather the target-column cosine; angular-margin math on (B,1) only.
    cos_t = jnp.sum(jnp.where(is_target, cosine, 0.0),
                    axis=-1, keepdims=True)                      # (B, 1)
    sin_t = jnp.sqrt(jnp.clip(1.0 - cos_t * cos_t, 0.0, 1.0))
    phi_t = cos_t * cos_m - sin_t * sin_m
    phi_t = jnp.where(cos_t - th > 0, phi_t, cos_t - mm)
    tgt = phi_t * s                                              # (B, 1)

    # Logits for this class tile: phi*s at the label column, s*cosine elsewhere.
    logits = jnp.where(is_target, tgt, cosine * s)               # (B, TC)
    if n_class % tile_c != 0:
        # Mask padded tail columns out of max / logsumexp.
        logits = jnp.where(class_ids < n_class, logits, -jnp.inf)

    # Online max / logsumexp accumulation across class tiles.
    m_prev = m_acc[...]
    m_new = jnp.maximum(m_prev, jnp.max(logits, axis=-1, keepdims=True))
    l_acc[...] = (l_acc[...] * jnp.exp(m_prev - m_new)
                  + jnp.sum(jnp.exp(logits - m_new), axis=-1, keepdims=True))
    m_acc[...] = m_new
    t_acc[...] = t_acc[...] + jnp.where(in_tile, tgt, 0.0)

    @pl.when(tile == n_tiles - 1)
    def _finalize():
        # CrossEntropyLoss (mean): mean_i( logsumexp(o_i) - o_i[label_i] )
        lse = m_acc[...] + jnp.log(l_acc[...])                   # (B, 1)
        loss_ref[0, 0] = jnp.sum(lse - t_acc[...]) / B
        # Top-1 accuracy in percent: label column attains the global row max.
        # (Exact ties count as correct; torch argmax picks one index —
        #  negligible difference with f32 logits.)
        correct = (t_acc[...] >= m_acc[...]).astype(jnp.float32)
        prec_ref[0, 0] = 100.0 * jnp.sum(correct) / B


def aam_softmax_forward(x, weight, label, m, s, *, tile_c=None):
    """Returns (loss, prec1) matching AAMsoftmax.forward."""
    B, D = x.shape
    C, Dw = weight.shape
    assert D == Dw

    if tile_c is None:
        tile_c = 2048                      # double-buffered bf16 tile ~1.5 MiB
    tile_c = min(_round_up(tile_c, 128), _round_up(C, 128))
    c_pad = _round_up(C, tile_c)
    n_tiles = c_pad // tile_c

    # Per-class inverse norms in f32 (faithful to torch's F.normalize on the
    # f32 parameter); streamed as a tiny (1, C) side input.
    w_inv = lax.rsqrt(jnp.maximum(jnp.sum(weight * weight, axis=-1), 1e-24))
    w_inv = jnp.pad(w_inv, (0, c_pad - C)).reshape(1, c_pad)

    # (D, C) bf16 weight layout: lane dim = classes (128-aligned), MXU-native
    # MKxKN contraction.  Done once here; in training it would live this way.
    w_t = jnp.pad(weight, ((0, c_pad - C), (0, 0))).T.astype(jnp.bfloat16)

    label2d = label.reshape(B, 1).astype(jnp.int32)

    kernel = functools.partial(
        _aam_kernel,
        cos_m=math.cos(m),
        sin_m=math.sin(m),
        th=math.cos(math.pi - m),
        mm=math.sin(math.pi - m) * m,
        s=float(s),
        n_class=C,
        tile_c=tile_c,
    )

    loss, prec1 = pl.pallas_call(
        kernel,
        out_shape=(jax.ShapeDtypeStruct((1, 1), jnp.float32),
                   jax.ShapeDtypeStruct((1, 1), jnp.float32)),
        grid=(n_tiles,),
        in_specs=[
            pl.BlockSpec((B, D), lambda i: (0, 0)),        # x: one DMA, revisited
            pl.BlockSpec((D, tile_c), lambda i: (0, i)),   # bf16 weight tile stream
            pl.BlockSpec((1, tile_c), lambda i: (0, i)),   # per-class 1/||w||
            pl.BlockSpec((B, 1), lambda i: (0, 0)),        # labels (tiny, one DMA)
        ],
        out_specs=(
            pl.BlockSpec(memory_space=pltpu.MemorySpace.SMEM),
            pl.BlockSpec(memory_space=pltpu.MemorySpace.SMEM),
        ),
        scratch_shapes=[
            pltpu.VMEM((B, 1), jnp.float32),   # running max
            pltpu.VMEM((B, 1), jnp.float32),   # running sum exp
            pltpu.VMEM((B, 1), jnp.float32),   # target logit
        ],
        compiler_params=pltpu.CompilerParams(
            dimension_semantics=("arbitrary",),
            vmem_limit_bytes=32 * 1024 * 1024,
        ),
    )(x, w_t, w_inv, label2d)

    return loss[0, 0], prec1[0, 0]


def _reference(x, weight, label, m, s):
    """Pure-JAX f32 reference of the torch module's forward."""
    xn = x / jnp.maximum(jnp.linalg.norm(x, axis=-1, keepdims=True), 1e-12)
    wn = weight / jnp.maximum(jnp.linalg.norm(weight, axis=-1, keepdims=True), 1e-12)
    cosine = xn @ wn.T
    sine = jnp.sqrt(jnp.clip(1.0 - cosine * cosine, 0.0, 1.0))
    phi = cosine * math.cos(m) - sine * math.sin(m)
    phi = jnp.where(cosine - math.cos(math.pi - m) > 0,
                    phi, cosine - math.sin(math.pi - m) * m)
    one_hot = jax.nn.one_hot(label, weight.shape[0], dtype=cosine.dtype)
    output = (one_hot * phi + (1.0 - one_hot) * cosine) * s
    lse = jax.scipy.special.logsumexp(output, axis=-1)
    tgt = jnp.take_along_axis(output, label[:, None], axis=-1)[:, 0]
    loss = jnp.mean(lse - tgt)
    prec1 = 100.0 * jnp.mean((jnp.argmax(output, axis=-1) == label)
                             .astype(jnp.float32))
    return loss, prec1


if __name__ == "__main__":
    # Module hyper-parameters (feature dim fixed to 192 by the module).
    n_class = 200          # non-multiple of 128: exercises the padded tail tile
    feat_dim = 192
    margin_m = 0.2
    scale_s = 30.0
    batch = 8

    key = jax.random.PRNGKey(0)
    kx, kw, kl = jax.random.split(key, 3)

    # xavier_normal_(weight, gain=1): std = sqrt(2 / (fan_in + fan_out))
    xavier_std = math.sqrt(2.0 / (n_class + feat_dim))
    weight = xavier_std * jax.random.normal(kw, (n_class, feat_dim), jnp.float32)

    x = jax.random.normal(kx, (batch, feat_dim), jnp.float32)
    label = jax.random.randint(kl, (batch,), 0, n_class, jnp.int32)

    # tile_c=128 forces 2 class tiles (one padded) to exercise the grid path.
    loss, prec1 = aam_softmax_forward(x, weight, label, margin_m, scale_s,
                                      tile_c=128)
    jax.block_until_ready((loss, prec1))

    ref_loss, ref_prec = _reference(x, weight, label, margin_m, scale_s)
    assert abs(float(loss) - float(ref_loss)) <= 5e-2 + 5e-2 * abs(float(ref_loss)), (
        float(loss), float(ref_loss))

    print("KERNEL_OK")
</pallas_src>

<mosaic_0001>
module attributes {stable_mosaic.version = 11 : i64} {
  func.func @_aam_kernel(%arg0: i32, %arg1: memref<8x192xf32, #tpu.memory_space<vmem>>, %arg2: memref<192x128xbf16, #tpu.memory_space<vmem>>, %arg3: memref<1x128xf32, #tpu.memory_space<vmem>>, %arg4: memref<8x1xi32, #tpu.memory_space<vmem>>, %arg5: memref<1x1xf32, #tpu.memory_space<smem>>, %arg6: memref<1x1xf32, #tpu.memory_space<smem>>, %arg7: memref<8x1xf32, #tpu.memory_space<vmem>>, %arg8: memref<8x1xf32, #tpu.memory_space<vmem>>, %arg9: memref<8x1xf32, #tpu.memory_space<vmem>>) attributes {dimension_semantics = [#tpu.dimension_semantics<arbitrary>], iteration_bounds = array<i64: 2>, scalar_prefetch = 0 : i64, scratch_operands = 3 : i64, tpu.core_type = #tpu.core_type<tc>, window_params = [{pipeline_mode = #tpu.pipeline_mode<synchronous>, transform_indices = @transform_0, window_bounds = array<i64: 8, 192>}, {transform_indices = @transform_1, window_bounds = array<i64: 192, 128>}, {transform_indices = @transform_2, window_bounds = array<i64: 1, 128>}, {pipeline_mode = #tpu.pipeline_mode<synchronous>, transform_indices = @transform_3, window_bounds = array<i64: 8, 1>}, {transform_indices = @transform_4, window_bounds = array<i64: 1, 1>}, {transform_indices = @transform_5, window_bounds = array<i64: 1, 1>}]} {
    %c0_i32 = arith.constant 0 : i32
    %0 = arith.cmpi eq, %arg0, %c0_i32 : i32
    %1 = arith.extui %0 : i1 to i32
    %c0_i32_0 = arith.constant 0 : i32
    %2 = arith.cmpi ne, %1, %c0_i32_0 : i32
    scf.if %2 {
      %cst_40 = arith.constant 0xFF800000 : f32
      %90 = vector.broadcast %cst_40 : f32 to vector<8x1xf32>
      %c0_41 = arith.constant 0 : index
      %c0_42 = arith.constant 0 : index
      %91 = vector.load %arg7[%c0_41, %c0_42] : memref<8x1xf32, #tpu.memory_space<vmem>>, vector<8x1xf32>
      tpu.vector_store %arg7[%c0_41, %c0_42], %90 {strides = array<i32>} : memref<8x1xf32, #tpu.memory_space<vmem>>, vector<8x1xf32>,
      %cst_43 = arith.constant 0.000000e+00 : f32
      %92 = vector.broadcast %cst_43 : f32 to vector<8x1xf32>
      %c0_44 = arith.constant 0 : index
      %c0_45 = arith.constant 0 : index
      %93 = vector.load %arg8[%c0_44, %c0_45] : memref<8x1xf32, #tpu.memory_space<vmem>>, vector<8x1xf32>
      tpu.vector_store %arg8[%c0_44, %c0_45], %92 {strides = array<i32>} : memref<8x1xf32, #tpu.memory_space<vmem>>, vector<8x1xf32>,
      %cst_46 = arith.constant 0.000000e+00 : f32
      %94 = vector.broadcast %cst_46 : f32 to vector<8x1xf32>
      %c0_47 = arith.constant 0 : index
      %c0_48 = arith.constant 0 : index
      %95 = vector.load %arg9[%c0_47, %c0_48] : memref<8x1xf32, #tpu.memory_space<vmem>>, vector<8x1xf32>
      tpu.vector_store %arg9[%c0_47, %c0_48], %94 {strides = array<i32>} : memref<8x1xf32, #tpu.memory_space<vmem>>, vector<8x1xf32>,
    } else {
    }
    %c0 = arith.constant 0 : index
    %c0_1 = arith.constant 0 : index
    %3 = vector.load %arg1[%c0, %c0_1] : memref<8x192xf32, #tpu.memory_space<vmem>>, vector<8x192xf32>
    %c0_2 = arith.constant 0 : index
    %c0_3 = arith.constant 0 : index
    %4 = vector.load %arg2[%c0_2, %c0_3] : memref<192x128xbf16, #tpu.memory_space<vmem>>, vector<192x128xbf16>
    %c0_4 = arith.constant 0 : index
    %c0_5 = arith.constant 0 : index
    %5 = vector.load %arg3[%c0_4, %c0_5] : memref<1x128xf32, #tpu.memory_space<vmem>>, vector<1x128xf32>
    %c0_6 = arith.constant 0 : index
    %c0_7 = arith.constant 0 : index
    %6 = vector.load %arg4[%c0_6, %c0_7] : memref<8x1xi32, #tpu.memory_space<vmem>>, vector<8x1xi32>
    %7 = arith.mulf %3, %3 : vector<8x192xf32>
    %cst = arith.constant dense<0.000000e+00> : vector<8xf32>
    %8 = vector.multi_reduction <add>, %7, %cst [1] : vector<8x192xf32> to vector<8xf32>
    %9 = vector.shape_cast %8 : vector<8xf32> to vector<8x1xf32>
    %cst_8 = arith.constant 1.000000e-24 : f32
    %10 = vector.broadcast %cst_8 : f32 to vector<8x1xf32>
    %11 = arith.maximumf %9, %10 : vector<8x1xf32>
    %12 = math.rsqrt %11 : vector<8x1xf32>
    %13 = arith.truncf %3 : vector<8x192xf32> to vector<8x192xbf16>
    %cst_9 = arith.constant dense<0.000000e+00> : vector<8x128xf32>
    %14 = tpu.matmul %13, %4, %cst_9 {dimension_numbers = #tpu.dot_dimension_numbers<[1], [0], [0], [1], [0, 0, 1, 1], [], []>} : vector<8x192xbf16>, vector<192x128xbf16>, vector<8x128xf32> -> vector<8x128xf32>
    %15 = vector.broadcast %12 : vector<8x1xf32> to vector<8x128xf32>
    %16 = arith.mulf %14, %15 : vector<8x128xf32>
    %17 = vector.broadcast %5 : vector<1x128xf32> to vector<8x128xf32>
    %18 = arith.mulf %16, %17 : vector<8x128xf32>
    %c128_i32 = arith.constant 128 : i32
    %19 = arith.muli %arg0, %c128_i32 : i32
    %20 = tpu.iota {dimensions = array<i32: 1>} : vector<8x128xi32>
    %21 = vector.broadcast %19 : i32 to vector<8x128xi32>
    %22 = arith.addi %21, %20 : vector<8x128xi32>
    %23 = vector.broadcast %6 : vector<8x1xi32> to vector<8x128xi32>
    %24 = arith.cmpi eq, %22, %23 : vector<8x128xi32>
    %25 = vector.broadcast %19 : i32 to vector<8x1xi32>
    %26 = arith.cmpi sge, %6, %25 : vector<8x1xi32>
    %c128_i32_10 = arith.constant 128 : i32
    %27 = arith.addi %19, %c128_i32_10 : i32
    %28 = vector.broadcast %27 : i32 to vector<8x1xi32>
    %29 = arith.cmpi slt, %6, %28 : vector<8x1xi32>
    %30 = arith.andi %26, %29 : vector<8x1xi1>
    %cst_11 = arith.constant 0.000000e+00 : f32
    %31 = vector.broadcast %cst_11 : f32 to vector<8x128xf32>
    %32 = arith.select %24, %18, %31 : vector<8x128xi1>, vector<8x128xf32>
    %cst_12 = arith.constant dense<0.000000e+00> : vector<8xf32>
    %33 = vector.multi_reduction <add>, %32, %cst_12 [1] : vector<8x128xf32> to vector<8xf32>
    %34 = vector.shape_cast %33 : vector<8xf32> to vector<8x1xf32>
    %35 = arith.mulf %34, %34 : vector<8x1xf32>
    %cst_13 = arith.constant 1.000000e+00 : f32
    %36 = vector.broadcast %cst_13 : f32 to vector<8x1xf32>
    %37 = arith.subf %36, %35 : vector<8x1xf32>
    %cst_14 = arith.constant 0.000000e+00 : f32
    %cst_15 = arith.constant 1.000000e+00 : f32
    %38 = vector.broadcast %cst_14 : f32 to vector<8x1xf32>
    %39 = arith.maximumf %38, %37 : vector<8x1xf32>
    %40 = vector.broadcast %cst_15 : f32 to vector<8x1xf32>
    %41 = arith.minimumf %40, %39 : vector<8x1xf32>
    %42 = math.sqrt %41 : vector<8x1xf32>
    %cst_16 = arith.constant 0.980066597 : f32
    %43 = vector.broadcast %cst_16 : f32 to vector<8x1xf32>
    %44 = arith.mulf %34, %43 : vector<8x1xf32>
    %cst_17 = arith.constant 0.198669329 : f32
    %45 = vector.broadcast %cst_17 : f32 to vector<8x1xf32>
    %46 = arith.mulf %42, %45 : vector<8x1xf32>
    %47 = arith.subf %44, %46 : vector<8x1xf32>
    %cst_18 = arith.constant -0.980066597 : f32
    %48 = vector.broadcast %cst_18 : f32 to vector<8x1xf32>
    %49 = arith.subf %34, %48 : vector<8x1xf32>
    %cst_19 = arith.constant 0.000000e+00 : f32
    %50 = vector.broadcast %cst_19 : f32 to vector<8x1xf32>
    %51 = arith.cmpf ogt, %49, %50 : vector<8x1xf32>
    %cst_20 = arith.constant 0.0397338644 : f32
    %52 = vector.broadcast %cst_20 : f32 to vector<8x1xf32>
    %53 = arith.subf %34, %52 : vector<8x1xf32>
    %54 = arith.select %51, %47, %53 : vector<8x1xi1>, vector<8x1xf32>
    %cst_21 = arith.constant 3.000000e+01 : f32
    %55 = vector.broadcast %cst_21 : f32 to vector<8x1xf32>
    %56 = arith.mulf %54, %55 : vector<8x1xf32>
    %cst_22 = arith.constant 3.000000e+01 : f32
    %57 = vector.broadcast %cst_22 : f32 to vector<8x128xf32>
    %58 = arith.mulf %18, %57 : vector<8x128xf32>
    %59 = vector.shape_cast %56 : vector<8x1xf32> to vector<8x1xf32>
    %60 = vector.broadcast %59 : vector<8x1xf32> to vector<8x128xf32>
    %61 = arith.select %24, %60, %58 : vector<8x128xi1>, vector<8x128xf32>
    %c200_i32 = arith.constant 200 : i32
    %62 = vector.broadcast %c200_i32 : i32 to vector<8x128xi32>
    %63 = arith.cmpi slt, %22, %62 : vector<8x128xi32>
    %cst_23 = arith.constant 0xFF800000 : f32
    %64 = vector.broadcast %cst_23 : f32 to vector<8x128xf32>
    %65 = arith.select %63, %61, %64 : vector<8x128xi1>, vector<8x128xf32>
    %c0_24 = arith.constant 0 : index
    %c0_25 = arith.constant 0 : index
    %66 = vector.load %arg7[%c0_24, %c0_25] : memref<8x1xf32, #tpu.memory_space<vmem>>, vector<8x1xf32>
    %cst_26 = arith.constant dense<0xFF800000> : vector<8xf32>
    %67 = vector.multi_reduction <maximumf>, %65, %cst_26 [1] : vector<8x128xf32> to vector<8xf32>
    %68 = vector.shape_cast %67 : vector<8xf32> to vector<8x1xf32>
    %69 = arith.maximumf %66, %68 : vector<8x1xf32>
    %c0_27 = arith.constant 0 : index
    %c0_28 = arith.constant 0 : index
    %70 = vector.load %arg8[%c0_27, %c0_28] : memref<8x1xf32, #tpu.memory_space<vmem>>, vector<8x1xf32>
    %71 = arith.subf %66, %69 : vector<8x1xf32>
    %72 = math.exp %71 : vector<8x1xf32>
    %73 = arith.mulf %70, %72 : vector<8x1xf32>
    %74 = vector.broadcast %69 : vector<8x1xf32> to vector<8x128xf32>
    %75 = arith.subf %65, %74 : vector<8x128xf32>
    %76 = math.exp %75 : vector<8x128xf32>
    %cst_29 = arith.constant dense<0.000000e+00> : vector<8xf32>
    %77 = vector.multi_reduction <add>, %76, %cst_29 [1] : vector<8x128xf32> to vector<8xf32>
    %78 = vector.shape_cast %77 : vector<8xf32> to vector<8x1xf32>
    %79 = arith.addf %73, %78 : vector<8x1xf32>
    %c0_30 = arith.constant 0 : index
    %c0_31 = arith.constant 0 : index
    %80 = vector.load %arg8[%c0_30, %c0_31] : memref<8x1xf32, #tpu.memory_space<vmem>>, vector<8x1xf32>
    tpu.vector_store %arg8[%c0_30, %c0_31], %79 {strides = array<i32>} : memref<8x1xf32, #tpu.memory_space<vmem>>, vector<8x1xf32>,
    %c0_32 = arith.constant 0 : index
    %c0_33 = arith.constant 0 : index
    %81 = vector.load %arg7[%c0_32, %c0_33] : memref<8x1xf32, #tpu.memory_space<vmem>>, vector<8x1xf32>
    tpu.vector_store %arg7[%c0_32, %c0_33], %69 {strides = array<i32>} : memref<8x1xf32, #tpu.memory_space<vmem>>, vector<8x1xf32>,
    %c0_34 = arith.constant 0 : index
    %c0_35 = arith.constant 0 : index
    %82 = vector.load %arg9[%c0_34, %c0_35] : memref<8x1xf32, #tpu.memory_space<vmem>>, vector<8x1xf32>
    %cst_36 = arith.constant 0.000000e+00 : f32
    %83 = vector.broadcast %cst_36 : f32 to vector<8x1xf32>
    %84 = arith.select %30, %56, %83 : vector<8x1xi1>, vector<8x1xf32>
    %85 = arith.addf %82, %84 : vector<8x1xf32>
    %c0_37 = arith.constant 0 : index
    %c0_38 = arith.constant 0 : index
    %86 = vector.load %arg9[%c0_37, %c0_38] : memref<8x1xf32, #tpu.memory_space<vmem>>, vector<8x1xf32>
    tpu.vector_store %arg9[%c0_37, %c0_38], %85 {strides = array<i32>} : memref<8x1xf32, #tpu.memory_space<vmem>>, vector<8x1xf32>,
    %c1_i32 = arith.constant 1 : i32
    %87 = arith.cmpi eq, %arg0, %c1_i32 : i32
    %88 = arith.extui %87 : i1 to i32
    %c0_i32_39 = arith.constant 0 : i32
    %89 = arith.cmpi ne, %88, %c0_i32_39 : i32
    scf.if %89 {
      %c0_40 = arith.constant 0 : index
      %c0_41 = arith.constant 0 : index
      %90 = vector.load %arg7[%c0_40, %c0_41] : memref<8x1xf32, #tpu.memory_space<vmem>>, vector<8x1xf32>
      %c0_42 = arith.constant 0 : index
      %c0_43 = arith.constant 0 : index
      %91 = vector.load %arg8[%c0_42, %c0_43] : memref<8x1xf32, #tpu.memory_space<vmem>>, vector<8x1xf32>
      %92 = math.log %91 : vector<8x1xf32>
      %93 = arith.addf %90, %92 : vector<8x1xf32>
      %c0_44 = arith.constant 0 : index
      %c0_45 = arith.constant 0 : index
      %94 = vector.load %arg9[%c0_44, %c0_45] : memref<8x1xf32, #tpu.memory_space<vmem>>, vector<8x1xf32>
      %95 = arith.subf %93, %94 : vector<8x1xf32>
      %96 = vector.shape_cast %95 : vector<8x1xf32> to vector<1x8x1xf32>
      %cst_46 = arith.constant dense<0.000000e+00> : vector<1xf32>
      %97 = vector.multi_reduction <add>, %96, %cst_46 [1, 2] : vector<1x8x1xf32> to vector<1xf32>
      %98 = vector.shape_cast %97 : vector<1xf32> to vector<1x1x1xf32>
      %99 = vector.extract %98[0, 0, 0] : f32 from vector<1x1x1xf32>
      %cst_47 = arith.constant 8.000000e+00 : f32
      %100 = arith.divf %99, %cst_47 : f32
      %c0_48 = arith.constant 0 : index
      %c0_49 = arith.constant 0 : index
      %101 = memref.load %arg5[%c0_48, %c0_49] : memref<1x1xf32, #tpu.memory_space<smem>>
      memref.store %100, %arg5[%c0_48, %c0_49] : memref<1x1xf32, #tpu.memory_space<smem>>
      %c0_50 = arith.constant 0 : index
      %c0_51 = arith.constant 0 : index
      %102 = vector.load %arg9[%c0_50, %c0_51] : memref<8x1xf32, #tpu.memory_space<vmem>>, vector<8x1xf32>
      %c0_52 = arith.constant 0 : index
      %c0_53 = arith.constant 0 : index
      %103 = vector.load %arg7[%c0_52, %c0_53] : memref<8x1xf32, #tpu.memory_space<vmem>>, vector<8x1xf32>
      %104 = arith.cmpf oge, %102, %103 : vector<8x1xf32>
      %105 = arith.extui %104 : vector<8x1xi1> to vector<8x1xi32>
      %106 = arith.sitofp %105 : vector<8x1xi32> to vector<8x1xf32>
      %107 = vector.shape_cast %106 : vector<8x1xf32> to vector<1x8x1xf32>
      %cst_54 = arith.constant dense<0.000000e+00> : vector<1xf32>
      %108 = vector.multi_reduction <add>, %107, %cst_54 [1, 2] : vector<1x8x1xf32> to vector<1xf32>
      %109 = vector.shape_cast %108 : vector<1xf32> to vector<1x1x1xf32>
      %110 = vector.extract %109[0, 0, 0] : f32 from vector<1x1x1xf32>
      %cst_55 = arith.constant 1.000000e+02 : f32
      %111 = arith.mulf %cst_55, %110 : f32
      %cst_56 = arith.constant 8.000000e+00 : f32
      %112 = arith.divf %111, %cst_56 : f32
      %c0_57 = arith.constant 0 : index
      %c0_58 = arith.constant 0 : index
      %113 = memref.load %arg6[%c0_57, %c0_58] : memref<1x1xf32, #tpu.memory_space<smem>>
      memref.store %112, %arg6[%c0_57, %c0_58] : memref<1x1xf32, #tpu.memory_space<smem>>
    } else {
    }
    return
  }
  func.func @transform_0(%arg0: i32) -> (i32, i32) {
    %c0_i32 = arith.constant 0 : i32
    %c0_i32_0 = arith.constant 0 : i32
    %c0_i32_1 = arith.constant 0 : i32
    return %c0_i32, %c0_i32_0 : i32, i32
  }
  func.func @transform_1(%arg0: i32) -> (i32, i32) {
    %c0_i32 = arith.constant 0 : i32
    %c0_i32_0 = arith.constant 0 : i32
    return %c0_i32, %arg0 : i32, i32
  }
  func.func @transform_2(%arg0: i32) -> (i32, i32) {
    %c0_i32 = arith.constant 0 : i32
    %c0_i32_0 = arith.constant 0 : i32
    return %c0_i32, %arg0 : i32, i32
  }
  func.func @transform_3(%arg0: i32) -> (i32, i32) {
    %c0_i32 = arith.constant 0 : i32
    %c0_i32_0 = arith.constant 0 : i32
    %c0_i32_1 = arith.constant 0 : i32
    return %c0_i32, %c0_i32_0 : i32, i32
  }
  func.func @transform_4(%arg0: i32) -> (i32, i32) {
    %c0_i32 = arith.constant 0 : i32
    %c0_i32_0 = arith.constant 0 : i32
    %c0_i32_1 = arith.constant 0 : i32
    return %c0_i32, %c0_i32_0 : i32, i32
  }
  func.func @transform_5(%arg0: i32) -> (i32, i32) {
    %c0_i32 = arith.constant 0 : i32
    %c0_i32_0 = arith.constant 0 : i32
    %c0_i32_1 = arith.constant 0 : i32
    return %c0_i32, %c0_i32_0 : i32, i32
  }
}

</mosaic_0001>

<bundles_post_ra>
// kernel: tpu_custom_call.1
= control target key start
LH: loop header
LB: loop body
LE: loop exit
PB: predicated region body
PF: predicated region fallthrough
CT: control target
= control target key end

     0   :  { %11 = vsyncpa [#allocation6], 0  ;;  %s1169_s0 = inlined_call_operand.hbm [shape: f32[8,192], index: 0, kind: input, shape index: {}]   ;;  %s1170_s1 = inlined_call_operand.hbm [shape: bf16[192,256], index: 1, kind: input, shape index: {}]   ;;  %s1171_s2 = inlined_call_operand.vmem [shape: f32[1,256], index: 2, kind: input, shape index: {}]   ;;  %s1172_s3 = inlined_call_operand.vmem [shape: s32[8,1], index: 3, kind: input, shape index: {}]   ;;  %s1173_s4 = inlined_call_operand.hbm [shape: f32[1,1], index: 4, kind: output, shape index: {0}]   ;;  %s1174_s5 = inlined_call_operand.hbm [shape: f32[1,1], index: 5, kind: output, shape index: {1}]  }
   0x1   :  { %12 = vsyncpa [#allocation9], 0 }
   0x2   :  { %14 = vsyncpa [#allocation9 + $0x1], 0 }
   0x3   :  { %15 = vsyncpa [#allocation7], 0 }
   0x4   :  { %16 = vsyncpa [#allocation12], 0  ;;  %s943_s18 = smov 0   ;;  %s945_s19 = smov 0  }
   0x5   :  { %s947_s20 = smov 0   ;;  %s949_s21 = smov 0  }
   0x6 LB: > { %s962_s22 = sadd.s32 4294967295, %s900_s21   ;;  %s965_s23 = sadd.s32 1, %s900_s21   ;;  %s900_s21 = sphi %s949_s21, %s1193_s21   ;;  %s896_s20 = sphi %s947_s20, %s1192_s20   ;;  %s892_s19 = sphi %s945_s19, %s1191_s19   ;;  %s888_s18 = sphi %s943_s18, %s1190_s18  }
   0x7   : > { %s47_s24 = ssub.s32 %s900_s21, %s965_s23  ;;  %s50_s25 = sadd.s32 1, %s896_s20 }
   0x8   : > { %p48_p0 = scmp.eq.s32.totalorder %s47_s24, 0  ;;  %p57_p1 = scmp.ne.s32.totalorder %s896_s20, %s892_s19 }
   0x9   : > { %p58_p2 = scmp.eq.s32.totalorder %s900_s21, 0  ;;  %p63_p3 = scmp.ne.s32.totalorder %s892_s19, %s888_s18 }
   0xa   : > { %s975_s26 = scalar_select %p48_p0, %s896_s20, %s50_s25  }
   0xb   : > { %p977_p4 = por %p58_p2, %p57_p1  ;;  %p1175_p5 = scmp.eq.s32.totalorder %s962_s22, 0 }
   0xc   : > { %p639_p6 = scmp.ge.s32.totalorder %s900_s21, 1  ;;  %p163_p7 = scmp.lt.s32.totalorder %s900_s21, 3 }
   0xd   : > { %p986_p8 = por %p1175_p5, %p63_p3  ;;  %s902_s30 = smov [#allocation5]  }
   0xe   : > { %p991_p10 = pnand %p639_p6, %p163_p7  ;;  %s176_s6 = sshll.u32 %s902_s30, 4  ;;  %s177_s6 = int_to_ptr.vmem [resolvable:$true] %s176_s6 }
   0xf   : > { %s1180_s28 = scalar_select %p986_p8, 1, 0 }
  0x10   : > { %s1181_s29 = scalar_select %p991_p10, 1, 0 }
  0x11   : > { %p691_p11 = pneg %p991_p10  ;;  %p700_p12 = scmp.lt.s32.totalorder %s900_s21, 2 }
  0x12   : > { %s190_s7 = sand.u32 1, %s896_s20   ;;  %s642_s11 = sshll.u32 %s900_s21, 6 }
  0x13   : > { %p1001_p13 = pnand %p691_p11, %p1175_p5  ;;  %p1007_p0 = pnand %p700_p12, %p977_p4 }
  0x14   : > { %s671_s10 = smul.u32 96, %s190_s7  ;;  %s772_s14 = scalar_lea.hbm %s1169_s0, 256 }
  0x15   : > { %s1183_s9 = scalar_select %p1007_p0, 1, 0 }
  0x16   : > { %p773_p1 = scmp.ne.s32.totalorder %s1169_s0, %s772_s14  ;;  %p774_p2 = pneg %p1001_p13 }
  0x17   : > { %p779_p4 = scmp.lt.u32.totalorder %s772_s14, %s1169_s0 }
  0x18   : > { %p775_p3 = pnand %p774_p2, %p773_p1 }
  0x1a   : > { %p776_p6 = pneg %p775_p3 }
  0x1c   : > { %p781_p7 = pnand %p779_p4, %p776_p6 }
  0x1e   : > { %784 = shalt.err (!%p781_p7)
}
  0x1f   : > { %s785_s24 = scalar_lea.vmem %s177_s6, 256  ;;  %p793_p5 = scmp.lt.s32.totalorder %s177_s6, %s177_s6 }
  0x20   : > { %p786_p11 = scmp.ne.s32.totalorder %s177_s6, %s785_s24  ;;  %p794_p8 = scmp.lt.s32.totalorder %s785_s24, %s785_s24 }
  0x22   : > { %p788_p12 = pnand %p786_p11, %p774_p2  ;;  %p795_p10 = por %p794_p8, %p793_p5 }
  0x24   : > { %p789_p9 = pneg %p788_p12 }
  0x26   : > { %p796_p0 = pnand %p795_p10, %p789_p9 }
  0x28   : > { %799 = shalt.err (!%p796_p0)
}
  0x29   : > { %694 = dma.hbm_to_vmem [thread:$0]  (!%p1001_p13), %s1169_s0, 256, %s177_s6, [#allocation6]  }
  0x2a   : > { %s1031_s12 = scalar_lea.hbm %s1170_s1, %s642_s11  ;;  %s194_s13 = scalar_lea.vmem [#allocation8], %s671_s10 }
  0x2b   : > { %s200_s14 = sshll.u32 %s194_s13, 4  ;;  %s1035_s8 = scalar_lea.sflag [#allocation9], %s190_s7  ;;  %s1033_s14 = int_to_ptr.vmem [resolvable:$true] %s200_s14 }
  0x2c   : > { %s800_s15 = scalar_lea.hbm %s1031_s12, 1536  ;;  %p1184_p8 = scmp.ne.s32.totalorder %s1183_s9, 0 }
  0x2d   : > { %p801_p5 = scmp.ne.s32.totalorder %s1031_s12, %s800_s15  ;;  %s805_s16 = scalar_lea.hbm %s1170_s1, 3072 }
  0x2e   : > { %p802_p9 = pneg %p1184_p8  ;;  %p806_p0 = scmp.lt.u32.totalorder %s1031_s12, %s1170_s1 }
  0x2f   : > { %p807_p1 = scmp.lt.u32.totalorder %s805_s16, %s800_s15  ;;  %p809_p3 = scmp.lt.u32.totalorder %s800_s15, %s1031_s12 }
  0x30   : > { %p803_p10 = pnand %p802_p9, %p801_p5 }
  0x31   : > { %p808_p2 = por %p807_p1, %p806_p0 }
  0x32   : > { %p804_p13 = pneg %p803_p10 }
  0x33   : > { %p810_p6 = por %p809_p3, %p808_p2 }
  0x35   : > { %p811_p4 = pnand %p810_p6, %p804_p13 }
  0x37   : > { %814 = shalt.err (!%p811_p4)
}
  0x38   : > { %s815_s7 = scalar_lea.vmem %s1033_s14, 1536  ;;  %s903_s10 = smov [#allocation8]  }
  0x39   : > { %p816_p7 = scmp.ne.s32.totalorder %s1033_s14, %s815_s7  ;;  %s820_s24 = sshll.u32 %s903_s10, 4  ;;  %s821_s24 = int_to_ptr.vmem [resolvable:$false] %s820_s24 }
  0x3a   : > { %s822_s21 = scalar_lea.vmem %s821_s24, 3072  ;;  %p823_p5 = scmp.lt.s32.totalorder %s1033_s14, %s821_s24 }
  0x3b   : > { %p818_p11 = pnand %p816_p7, %p802_p9  ;;  %p824_p10 = scmp.lt.s32.totalorder %s822_s21, %s815_s7 }
  0x3d   : > { %p819_p12 = pneg %p818_p11  ;;  %p825_p0 = por %p824_p10, %p823_p5 }
  0x3f   : > { %p826_p1 = pnand %p825_p0, %p819_p12 }
  0x41   : > { %829 = shalt.err (!%p826_p1)
}
  0x42   : > { %s904_s25 = smov 128   ;;  %s905_s27 = smov 64  }
  0x43   : > { %s906_s30 = smov 4   ;;  %p1185_p9 = scmp.ne.s32.totalorder %s1181_s29, 0 }
  0x44   : > { %698 = dma.hbm_to_vmem [thread:$0]  (!%p1184_p8), %s1031_s12, 1536, %s1033_s14, %s1035_s8, %s904_s25, %s905_s27, %s906_s30  }
  0x45   : > { %218 = sbr.rel (%p1185_p9) target bundleno = 1230 (0x4ce), region = 36  ;;  %p1186_p13 = scmp.eq.s32.totalorder (!%p1185_p9), %s962_s22, 0 }
  0x4c   : > { %871 = dma.done.wait (%p1186_p13), [#allocation6], 256   ;;  %p1187_p2 = pmov %p1186_p13 }
  0x4d   : > { %s224_s13 = sand.u32 1, %s892_s19   ;;  %p1188_p3 = scmp.ne.s32.totalorder %s1180_s28, 0 }
  0x4e   : > { %873 = vsyncadd (%p1187_p2), [#allocation6], 4294967040  ;;  %s672_s15 = smul.u32 96, %s224_s13  ;;  %s225_s6 = scalar_lea.sflag [#allocation9], %s224_s13 }
  0x50   : > { %s1070_s11 = scalar_lea.vmem [#allocation8], %s672_s15 }
  0x51   : > { %875 = dma.done.wait (%p1188_p3), %s225_s6, 1536  }
  0x52   : > { %877 = vsyncadd (%p1188_p3), %s225_s6, 4294965760  ;;  %p253_p8 = scmp.lt.s32.totalorder %s962_s22, 1  ;;  %p1189_p6 = scmp.ne.s32.totalorder %s962_s22, 0 }
  0x53   : > { %vm261_vm0 = vcmask (!%p1189_p6), 7168   ;;  %v907_v0 = vmov (!%p1189_p6), -inf   ;;  %v908_v1 = vmov (!%p1189_p6), 0.0  }
  0x54   : > { %s1078_s29 = scalar_select %p253_p8, %s962_s22, 1 }
  0x55   : > { %260 = sbr.rel (%p1189_p6) target bundleno = 92 (0x5c), region = 48  ;;  %262 = vst.msk [vmem:[#allocation2] sm:$0xff] (!%p1189_p6), %vm261_vm0, %v907_v0  ;;  %263 = vst.msk [vmem:[#allocation3] sm:$0xff] (!%p1189_p6), %vm261_vm0, %v908_v1 }
  0x56   : > { %s255_s14 = scalar_lea.vmem %s1171_s2, %s1078_s29  ;;  %264 = vst.msk [vmem:[#allocation4] sm:$0xff] (!%p1189_p6), %vm261_vm0, %v908_v1 }
  0x5c PF: > { %v750_v2 = vld [vmem:[%s1070_s11] sm:$0xff]   ;;  %v909_v3 = vmov 0   ;;  %v751_v4 = vld [vmem:[%s1070_s11 + $0x8] sm:$0xff]   ;;  %v752_v5 = vld [vmem:[%s1070_s11 + $0x10] sm:$0xff]   ;;  %vm295_vm1 = vcmask 523264   ;;  %v428_v26 = vlaneseq  ;;  %s660_s16 = sshll.u32 %s962_s22, 7 }
  0x5d   : > { %379 = vmatprep.subr.bf16.mxu0 %v909_v3  ;;  %748 = vset.pattern.permute.xlu0 %v909_v3  ;;  %v753_v6 = vld [vmem:[%s1070_s11 + $0x18] sm:$0xff]   ;;  %v265_v8 = vld [vmem:[#allocation5] sm:$0xff]  ;;  %v754_v12 = vld [vmem:[%s1070_s11 + $0x20] sm:$0xff]   ;;  %v430_v28 = vstv %s660_s16  ;;  %s437_s7 = sadd.s32 128, %s660_s16  ;;  %vm487_vm10 = vcmask 7168   ;;  %p663_p4 = scmp.ne.s32.totalorder %s962_s22, 1 }
  0x5e   : > { %380 = vmatpush1.bf16.msra.mxu0 %v750_v2  ;;  %749 = vset.pattern.permute.xlu1 %v909_v3  ;;  %v266_v7 = vld [vmem:[#allocation5 + $0x8] sm:$0xff]  ;;  %v293_v10 = vmul.f32 %v265_v8, %v265_v8  ;;  %v755_v15 = vld [vmem:[%s1070_s11 + $0x28] sm:$0xff]   ;;  %v756_v16 = vld [vmem:[%s1070_s11 + $0x30] sm:$0xff]   ;;  %v302_v23 = vpack.c.bf16 %v265_v8, %v265_v8  ;;  %v429_v27 = vand.u32 127, %v428_v26  ;;  %v438_v48 = vstv %s437_s7 }
  0x5f   : > { %381 = vmatprep.subr.bf16.mxu0 %v909_v3  ;;  %v303_v9 = vpack.c.bf16 %v266_v7, %v266_v7  ;;  %v294_v11 = vmul.f32 %v266_v7, %v266_v7  ;;  %v757_v17 = vld [vmem:[%s1070_s11 + $0x38] sm:$0xff]   ;;  %v758_v18 = vld [vmem:[%s1070_s11 + $0x40] sm:$0xff]   ;;  %v759_v19 = vld [vmem:[%s1070_s11 + $0x48] sm:$0xff]  }
  0x60   : > { %v292_v20 = vld [vmem:[%s1172_s3] sm:$0xff]  ;;  %v760_v21 = vld [vmem:[%s1070_s11 + $0x50] sm:$0xff]   ;;  %v431_v30 = vadd.s32 %v430_v28, %v429_v27  ;;  %v490_v59 = vld [vmem:[#allocation4] sm:$0xff] }
  0x61   : > { %658 = vmatprep.mubr.msk.bf16.mxu0 %vm295_vm1, %v303_v9  ;;  %v296_v13 = vsel %vm295_vm1, %v294_v11, 0.0  ;;  %v761_v22 = vld [vmem:[%s1070_s11 + $0x58] sm:$0xff]   ;;  %vm439_vm5 = vcmp.lt.s32.totalorder %v292_v20, %v438_v48  ;;  %vm436_vm6 = vcmp.ge.s32.totalorder %v292_v20, %v430_v28 }
  0x62   : > { %382 = vmatpush1.bf16.msra.mxu0 %v751_v4  ;;  %v297_v14 = vadd.f32 %v296_v13, %v293_v10  ;;  %v659_v33 = vld [vmem:[%s255_s14] ss:$0 sm:$0xff]  ;;  %vm440_vm8 = vmand %vm436_vm6, %vm439_vm5  ;;  %vm465_vm9 = vcmp.lt.s32.totalorder %v431_v30, 200  ;;  %v471_v10 = vld [vmem:[#allocation3] sm:$0xff] }
  0x63   : > { %383 = vmatprep.subr.bf16.mxu0 %v909_v3  ;;  %v467_v0 = vld [vmem:[#allocation2] sm:$0xff] }
  0x64   : > { %298 = vadd.xlane.f32.xlu0 %v297_v14 }
  0x66   : > { %384 = vmatpush1.bf16.msra.mxu0 %v752_v5 }
  0x67   : > { %385 = vmatprep.subr.bf16.mxu0 %v909_v3 }
  0x6a   : > { %386 = vmatpush1.bf16.msra.mxu0 %v753_v6 }
  0x6b   : > { %387 = vmatprep.subr.bf16.mxu0 %v909_v3 }
  0x6e   : > { %388 = vmatpush1.bf16.msra.mxu0 %v754_v12 }
  0x6f   : > { %389 = vmatprep.subr.bf16.mxu0 %v909_v3 }
  0x72   : > { %390 = vmatpush1.bf16.msra.mxu0 %v755_v15 }
  0x73   : > { %391 = vmatprep.subr.bf16.mxu0 %v909_v3 }
  0x76   : > { %392 = vmatpush1.bf16.msra.mxu0 %v756_v16 }
  0x77   : > { %393 = vmatprep.subr.bf16.mxu0 %v909_v3 }
  0x7a   : > { %394 = vmatpush1.bf16.msra.mxu0 %v757_v17  ;;  %433 = vperm.xlu0 %748, %v292_v20  }
  0x7b   : > { %395 = vmatprep.subr.bf16.mxu0 %v909_v3 }
  0x7e   : > { %396 = vmatpush1.bf16.msra.mxu0 %v758_v18 }
  0x7f   : > { %397 = vmatprep.subr.bf16.mxu0 %v909_v3 }
  0x82   : > { %398 = vmatpush1.bf16.msra.mxu0 %v759_v19 }
  0x83   : > { %399 = vmatprep.subr.bf16.mxu0 %v909_v3 }
  0x86   : > { %400 = vmatpush1.bf16.msra.mxu0 %v760_v21  ;;  %v910_v21 = vmov (!%p663_p4), 0.0  }
  0x87   : > { %401 = vmatprep.subr.bf16.mxu0 %v909_v3 }
  0x8a   : > { %402 = vmatpush1.bf16.msra.mxu0 %v761_v22 }
  0x8d   : > { %412 = vmatmul.mubr.bf16.vlgmr.msra.gmra.mrb[0].mxu0 %v302_v23 }
  0xf1   : > { %v299_v24 = vpop.xlane.xlu0 %298 }
  0xf2   : > { %v300_v25 = vmax.f32 %v299_v24, 1e-24 }
  0xf4   : > { %762 = vrsqrt.f32 %v300_v25 }
  0xf9   : > { %v434_v31 = vpop.permute.xlu0 %433 }
  0xfa   : > { %vm435_vm2 = vcmp.eq.s32.totalorder %v431_v30, %v434_v31 }
  0xfe   : > { %v763_v29 = vpop.eup %762 }
 0x160   : > { %v413_v32 = vpop.f32.mrb[0].mxu0 }
 0x161   : > { %v419_v34 = vmul.f32 %v763_v29, %v413_v32  ;;  %v415_v35 = vpop.f32.mrb[1].mxu0 }
 0x162   : > { %v416_v36 = vpop.f32.mrb[2].mxu0 }
 0x163   : > { %v417_v37 = vpop.f32.mrb[3].mxu0  ;;  %v426_v38 = vmul.f32 %v659_v33, %v419_v34 }
 0x165   : > { %v441_v39 = vsel %vm435_vm2, %v426_v38, 0.0  ;;  %v463_v57 = vmul.f32 30.0, %v426_v38 }
 0x166   : > { %442 = vadd.xlane.f32.xlu1 %v441_v39 }
 0x1f3   : > { %v443_v40 = vpop.xlane.xlu1 %442 }
 0x1f4   : > { %v444_v41 = vmul.f32 %v443_v40, %v443_v40  ;;  %v661_v51 = vadd.f32 0.9800666, %v443_v40  ;;  %v455_v52 = vmul.f32 0.9800666, %v443_v40  ;;  %v662_v55 = vadd.f32 -0.039733864, %v443_v40 }
 0x1f6   : > { %v445_v42 = vsub.f32 1.0, %v444_v41  ;;  %vm459_vm7 = vcmp.gt.f32.partialorder %v661_v51, 0.0 }
 0x1f8   : > { %v446_v43 = vmax.f32 %v445_v42, 0.0 }
 0x1fa   : > { %v447_v44 = vmin.f32 %v446_v43, 1.0 }
 0x1fc   : > { %764 = vrsqrt.f32 %v447_v44  ;;  %vm450_vm3 = vcmp.eq.f32.partialorder %v447_v44, inf  ;;  %v453_v47 = vand.u32 2147483648, %v447_v44  ;;  %vm452_vm4 = vcmp.eq.f32.partialorder %v447_v44, 0.0 }
 0x206   : > { %v765_v45 = vpop.eup %764 }
 0x207   : > { %v449_v46 = vmul.f32 %v765_v45, %v447_v44 }
 0x209   : > { %v451_v49 = vsel %vm450_vm3, %v447_v44, %v449_v46 }
 0x20a   : > { %v454_v50 = vsel %vm452_vm4, %v453_v47, %v451_v49 }
 0x20b   : > { %v456_v53 = vmul.f32 0.19866933, %v454_v50 }
 0x20d   : > { %v457_v54 = vsub.f32 %v455_v52, %v456_v53 }
 0x20f   : > { %v461_v56 = vsel %vm459_vm7, %v457_v54, %v662_v55 }
 0x210   : > { %v462_v58 = vmul.f32 30.0, %v461_v56 }
 0x212   : > { %v464_v60 = vsel %vm435_vm2, %v462_v58, %v463_v57  ;;  %v491_v61 = vsel %vm440_vm8, %v462_v58, 0.0 }
 0x213   : > { %v466_v62 = vsel %vm465_vm9, %v464_v60, -inf  ;;  %v492_v63 = vadd.f32 %v491_v61, %v490_v59 }
 0x214   : > { %468 = vmax.xlane.f32.xlu1 %v466_v62 }
 0x215   : > { %493 = vst.msk [vmem:[#allocation4] sm:$0xff] %vm487_vm10, %v492_v63 }
 0x21c   : > { %v503_v18 = vld [vmem:[#allocation4] sm:$0xff] (!%p663_p4) }
 0x2a1   : > { %v469_v1 = vpop.xlane.xlu1 %468 }
 0x2a2   : > { %v470_v2 = vmax.f32 %v467_v0, %v469_v1 }
 0x2a4   : > { %v472_v3 = vsub.f32 %v467_v0, %v470_v2  ;;  %489 = vst.msk [vmem:[#allocation2] sm:$0xff] %vm487_vm10, %v470_v2  ;;  %478 = vperm.xlu1 %749, %v470_v2  }
 0x2a6   : > { %v473_v8 = vmul.f32 1.442695, %v472_v3 }
 0x2ab   : > { %v498_v16 = vld [vmem:[#allocation2] sm:$0xff] (!%p663_p4) }
 0x2ac   : > { %vm522_vm11 = vcmp.ge.f32.partialorder (!%p663_p4), %v503_v18, %v498_v16 }
 0x2ad   : > { %v664_v22 = vsel (!%p663_p4), %vm522_vm11, 1.0, %v910_v21 }
 0x2ae   : > { %v525_v24 = vsel (!%p663_p4), %vm487_vm10, %v664_v22, 0.0 }
 0x323   : > { %v479_v4 = vpop.permute.xlu1 %478 }
 0x324   : > { %v481_v5 = vsub.f32 %v466_v62, %v479_v4 }
 0x326   : > { %v482_v6 = vmul.f32 1.442695, %v481_v5 }
 0x328   : > { %766 = vpow2.f32 %v482_v6 }
 0x329   : > { %768 = vpow2.f32 %v473_v8 }
 0x332   : > { %v767_v7 = vpop.eup %766 }
 0x333   : > { %484 = vadd.xlane.f32.xlu1 %v767_v7  ;;  %v769_v9 = vpop.eup %768 }
 0x334   : > { %v475_v11 = vmul.f32 %v769_v9, %v471_v10 }
 0x3bd   : > { %497 = sbr.rel (%p663_p4) target bundleno = 1202 (0x4b2), region = 52 }
 0x3c0   : > { %v485_v12 = vpop.xlane.xlu1 %484 }
 0x3c1   : > { %v486_v13 = vadd.f32 %v485_v12, %v475_v11 }
 0x3c3   : > { %488 = vst.msk [vmem:[#allocation3] sm:$0xff] %vm487_vm10, %v486_v13 }
 0x3ca   : > { %v499_v14 = vld [vmem:[#allocation3] sm:$0xff] }
 0x3cb   : > { %770 = vlog2.f32 %v499_v14 }
 0x3d5   : > { %v771_v15 = vpop.eup %770 }
 0x3d6   : > { %v501_v17 = vmul.f32 0.6931472, %v771_v15 }
 0x3d8   : > { %v502_v19 = vadd.f32 %v501_v17, %v498_v16 }
 0x3da   : > { %v504_v20 = vsub.f32 %v502_v19, %v503_v18 }
 0x3dc   : > { %v505_v23 = vsel %vm487_vm10, %v504_v20, 0.0 }
 0x3dd   : > { %506 = vadd.xlane.f32.xlu0 %v505_v23 }
 0x3e1   : > { %526 = vadd.xlane.f32.xlu0 %v525_v24 }
 0x46a   : > { %v507_v25 = vpop.xlane.xlu0 %506 }
 0x46b   : > { %v508_v26 = vrot.slane %v507_v25, 4 }
 0x46d   : > { %v509_v27 = vadd.f32 %v508_v26, %v507_v25 }
 0x46e   : > { %v527_v28 = vpop.xlane.xlu0 %526 }
 0x46f   : > { %v510_v29 = vrot.slane %v509_v27, 2  ;;  %v528_v30 = vrot.slane %v527_v28, 4 }
 0x471   : > { %v529_v31 = vadd.f32 %v528_v30, %v527_v28  ;;  %v511_v32 = vadd.f32 %v510_v29, %v509_v27 }
 0x473   : > { %v530_v33 = vrot.slane %v529_v31, 2  ;;  %v512_v34 = vrot.slane %v511_v32, 1 }
 0x475   : > { %v531_v35 = vadd.f32 %v530_v33, %v529_v31  ;;  %v513_v36 = vadd.f32 %v512_v34, %v511_v32 }
 0x477   : > { %673 = vpush %v513_v36  ;;  %v532_v37 = vrot.slane %v531_v35, 1 }
 0x479   : > { %v533_v38 = vadd.f32 %v532_v37, %v531_v35 }
 0x47b   : > { %675 = vpush %v533_v38 }
 0x4a8   : > { %s674_s10 = spop %673 }
 0x4a9   : > { %s517_s24 = smul.f32 0.125, %s674_s10 }
 0x4ab   : > { %519 = sst [smem:[#allocation10]] %s517_s24 }
 0x4ac   : > { %s676_s21 = spop %675 }
 0x4ad   : > { %s535_s25 = smul.f32 100.0, %s676_s21 }
 0x4af   : > { %s538_s27 = smul.f32 0.125, %s535_s25 }
 0x4b1   : > { %540 = sst [smem:[#allocation11]] %s538_s27 }
 0x4b2 PF: > { %p702_p7 = scmp.eq.s32.totalorder %s962_s22, 1  ;;  %s830_s15 = scalar_lea.hbm %s1173_s4, 16 }
 0x4b3   : > { %p831_p11 = scmp.ne.s32.totalorder %s1173_s4, %s830_s15  ;;  %p836_p10 = scmp.lt.u32.totalorder %s830_s15, %s1173_s4 }
 0x4b5   : > { %p832_p12 = pnand %p831_p11, %p702_p7 }
 0x4b7   : > { %p833_p5 = pneg %p832_p12 }
 0x4b9   : > { %p838_p0 = pnand %p836_p10, %p833_p5 }
 0x4bb   : > { %841 = shalt.err (!%p838_p0)
}
 0x4bc   : > { %s911_s12 = smov [#allocation10]   ;;  %s842_s17 = scalar_lea.hbm %s1174_s5, 16 }
 0x4bd   : > { %684 = dma.smem_to_hbm (%p702_p7), %s911_s12, 16, %s1173_s4, [#allocation7]  }
 0x4be   : > { %p843_p1 = scmp.ne.s32.totalorder %s1174_s5, %s842_s17  ;;  %p848_p2 = scmp.lt.u32.totalorder %s842_s17, %s1174_s5 }
 0x4c0   : > { %p844_p9 = pnand %p843_p1, %p702_p7 }
 0x4c2   : > { %p845_p13 = pneg %p844_p9 }
 0x4c4   : > { %p850_p3 = pnand %p848_p2, %p845_p13 }
 0x4c6   : > { %853 = shalt.err (!%p850_p3)
}
 0x4c7   : > { %s912_s21 = smov [#allocation11]  }
 0x4c8   : > { %686 = dma.smem_to_hbm (%p702_p7), %s912_s21, 16, %s1174_s5, [#allocation12]  }
 0x4c9   : > { %879 = dma.done.wait (%p702_p7), [#allocation7], 16  }
 0x4ca   : > { %881 = vsyncadd (%p702_p7), [#allocation7], 4294967280 }
 0x4cb   : > { %883 = dma.done.wait (%p702_p7), [#allocation12], 16  }
 0x4cc   : > { %885 = vsyncadd (%p702_p7), [#allocation12], 4294967280 }
 0x4cd   : > { %567 = sfence }
 0x4ce PF: > { %p19_p8 = scmp.ge.s32.totalorder %s965_s23, 4   ;;  %s1190_s18 = smov %s892_s19 }
 0x4cf   : > { %s1191_s19 = smov %s896_s20  ;;  %s1192_s20 = smov %s975_s26 }
 0x4d0   : > { %s1193_s21 = smov %s965_s23  ;;  %21 = sbr.rel (!%p19_p8) target bundleno = 6 (0x6), region = 99 }
 0x4d7   :  { %573 = vsyncpa [#allocation6], 1 }
 0x4d8   :  { %575 = vsyncpa [#allocation6 + $0x1], 1 }
 0x4d9   :  { %576 = vsyncpa [#allocation9], 1 }
 0x4da   :  { %578 = vsyncpa [#allocation9 + $0x1], 1 }
 0x4db   :  { %579 = vsyncpa [#allocation7], 1 }
 0x4dc   :  { %581 = vsyncpa [#allocation7 + $0x1], 1 }
 0x4dd   :  { %582 = vsyncpa [#allocation12], 1 }

</bundles_post_ra>
